<compile_context>
chip_gen: v5e
topology: v5e:2x2
jax: 0.10.0
libtpu: 0.0.40
codegen_flags: <defaults>
</compile_context>

<pallas_src>
import math

import jax
import jax.numpy as jnp
from jax.experimental import pallas as pl
from jax.experimental.pallas import tpu as pltpu

_LOG_MAX = math.log(1e30)
_EPS = 1e-7  # epsilon_like(...) in the reference tpps code


def _adaptive_gumbel_kernel(x_ref, alpha_ref, nia_ref, o_ref):
    # alpha_ref / nia_ref are (1, tile_lane); broadcast over the sublane axis.
    x = jnp.minimum(x_ref[...].astype(jnp.float32), _LOG_MAX)
    y = 1.0 + alpha_ref[...] * jnp.exp(x)
    # y >= 1 so log(y) is safe.  Matches the torch pow() formulation including
    # its corner cases: for very negative x the output is exactly 0; if y
    # overflows to inf, exp(nia * inf) = 0 and the output saturates to 1.
    o_ref[...] = (1.0 - jnp.exp(nia_ref[...] * jnp.log(y))).astype(o_ref.dtype)


def _round_up(v, m):
    return ((v + m - 1) // m) * m


def _vmem_capacity_bytes():
    try:
        return int(pltpu.get_tpu_info().vmem_capacity_bytes)
    except Exception:
        return 64 << 20  # conservative (v7x-sized) fallback


def adaptive_gumbel(x, alpha, *, block_bytes=None):
    """x: (..., units) float; alpha: (units,) float32 parameter."""
    units = alpha.shape[0]
    if units != 1:
        assert x.shape[-1] == units, (
            "Final dim of input shape must match num parameters.")

    orig_shape = x.shape
    out_dtype = x.dtype
    feat = orig_shape[-1]
    rows = 1
    for d in orig_shape[:-1]:
        rows *= d
    if rows == 0 or feat == 0:
        return jnp.zeros(orig_shape, out_dtype)

    # --- alpha preprocessing: once, on a tiny (units,) vector ---------------
    alpha_c = jnp.maximum(alpha.astype(jnp.float32), 0.0) + _EPS
    neg_inv_alpha = -1.0 / alpha_c
    if units == 1:  # units == 1 broadcasts over the whole last dim
        alpha_c = jnp.broadcast_to(alpha_c, (feat,))
        neg_inv_alpha = jnp.broadcast_to(neg_inv_alpha, (feat,))

    # --- lane-dense packing: g channel groups per 128-multiple lane row -----
    g_min = 128 // math.gcd(feat, 128)
    if g_min > 1 and rows % g_min == 0:
        g = g_min                      # lane = g*feat is a multiple of 128
    else:
        g = 1                          # no pad: fall back to full-feat blocks
    lane = g * feat
    rows_p = rows // g

    alpha_lane = jnp.tile(alpha_c, g).reshape(1, lane)
    nia_lane = jnp.tile(neg_inv_alpha, g).reshape(1, lane)

    # --- tile sizing from a VMEM budget --------------------------------------
    itemsize = jnp.dtype(x.dtype).itemsize
    sublane_align = {4: 8, 2: 16, 1: 32}.get(itemsize, 8)
    vmem_cap = _vmem_capacity_bytes()
    if block_bytes is None:
        # ~5.3 MiB/buffer on 64 MiB parts (v7x), ~10.7 MiB on 128 MiB parts.
        block_bytes = int(min(16 << 20, max(2 << 20, vmem_cap // 12)))

    row_bytes = lane * itemsize
    if sublane_align * row_bytes > block_bytes and lane > 128:
        # Very wide rows: add a lane grid axis so blocks stay in budget.
        tile_rows = sublane_align if rows_p >= sublane_align else rows_p
        tile_lane = (block_bytes // max(tile_rows * itemsize, 1)) // 128 * 128
        tile_lane = int(min(max(tile_lane, 128), lane))
    else:
        tile_lane = lane
        budget_rows = (block_bytes // max(row_bytes, 1)) // sublane_align
        budget_rows = max(budget_rows * sublane_align, sublane_align)
        # Aim for >= ~8 grid steps when data allows (megacore + pipelining).
        target_rows = _round_up(pl.cdiv(rows_p, 8), sublane_align)
        tile_rows = min(budget_rows, target_rows)
        if tile_rows >= rows_p:
            tile_rows = rows_p         # single full-extent block on the row dim

    grid = (pl.cdiv(rows_p, tile_rows), pl.cdiv(lane, tile_lane))

    # --- flatten / pack (no padding, no post-slice) ---------------------------
    x2d = x.reshape(rows_p, lane)

    n_elems = rows * feat
    cost = pl.CostEstimate(
        flops=5 * n_elems,
        transcendentals=3 * n_elems,
        bytes_accessed=2 * n_elems * itemsize + 2 * lane * 4,
    )

    # Double-buffered x + out blocks plus the tiny alpha rows; scale the limit
    # from the actual footprint and the device's physical VMEM.
    block_vmem = tile_rows * tile_lane * itemsize
    vmem_limit = int(min(max(5 * block_vmem + (2 << 20), 16 << 20),
                         vmem_cap * 3 // 4))

    out = pl.pallas_call(
        _adaptive_gumbel_kernel,
        out_shape=jax.ShapeDtypeStruct((rows_p, lane), out_dtype),
        grid_spec=pltpu.PrefetchScalarGridSpec(
            num_scalar_prefetch=0,
            grid=grid,
            in_specs=[
                pl.BlockSpec((tile_rows, tile_lane), lambda i, j: (i, j)),
                pl.BlockSpec((1, tile_lane), lambda i, j: (0, j)),
                pl.BlockSpec((1, tile_lane), lambda i, j: (0, j)),
            ],
            out_specs=pl.BlockSpec((tile_rows, tile_lane), lambda i, j: (i, j)),
        ),
        compiler_params=pltpu.CompilerParams(
            dimension_semantics=("parallel", "arbitrary"),
            vmem_limit_bytes=vmem_limit,
        ),
        cost_estimate=cost,
    )(x2d, alpha_lane, nia_lane)

    return out.reshape(orig_shape)


def adaptive_gumbel_ref(x, alpha):
    alpha = jnp.maximum(alpha.astype(jnp.float32), 0.0) + _EPS
    alpha = alpha.reshape((1,) * (x.ndim - 1) + (alpha.shape[-1],))
    xc = jnp.minimum(x.astype(jnp.float32), _LOG_MAX)
    y = 1.0 + alpha * jnp.exp(xc)
    return (1.0 - y ** (-1.0 / alpha)).astype(x.dtype)


if __name__ == "__main__":
    units = 32
    batch, seq = 2, 8                      # small demo shape (2, 8, 32)
    key = jax.random.PRNGKey(0)
    x = jax.random.normal(key, (batch, seq, units), dtype=jnp.float32) * 3.0

    # Deterministic parameter init, matching nn.init.constant_(alpha, 1.0)
    alpha = jnp.ones((units,), dtype=jnp.float32)

    out = adaptive_gumbel(x, alpha)
    out = jax.block_until_ready(out)

    ref = adaptive_gumbel_ref(x, alpha)
    assert out.shape == x.shape and out.dtype == x.dtype
    assert jnp.allclose(out, ref, atol=1e-5, rtol=1e-5), "mismatch vs reference"

    # Ragged / non-packable shape exercise (rows not divisible by g, odd rows).
    x2 = jax.random.normal(jax.random.PRNGKey(1), (3, 7, units),
                           dtype=jnp.float32) * 2.0
    out2 = jax.block_until_ready(adaptive_gumbel(x2, alpha))
    assert jnp.allclose(out2, adaptive_gumbel_ref(x2, alpha),
                        atol=1e-5, rtol=1e-5), "mismatch vs reference (ragged)"

    print("KERNEL_OK")
</pallas_src>

<mosaic_0001>
module attributes {stable_mosaic.version = 11 : i64} {
  func.func @_adaptive_gumbel_kernel(%arg0: i32, %arg1: i32, %arg2: memref<4x128xf32, #tpu.memory_space<vmem>>, %arg3: memref<1x128xf32, #tpu.memory_space<vmem>>, %arg4: memref<1x128xf32, #tpu.memory_space<vmem>>, %arg5: memref<4x128xf32, #tpu.memory_space<vmem>>) attributes {dimension_semantics = [#tpu.dimension_semantics<parallel>, #tpu.dimension_semantics<arbitrary>], iteration_bounds = array<i64: 1, 1>, scalar_prefetch = 0 : i64, scratch_operands = 0 : i64, tpu.core_type = #tpu.core_type<tc>, window_params = [{transform_indices = @transform_0, window_bounds = array<i64: 4, 128>}, {transform_indices = @transform_1, window_bounds = array<i64: 1, 128>}, {transform_indices = @transform_2, window_bounds = array<i64: 1, 128>}, {transform_indices = @transform_3, window_bounds = array<i64: 4, 128>}]} {
    %c0 = arith.constant 0 : index
    %c0_0 = arith.constant 0 : index
    %0 = vector.load %arg2[%c0, %c0_0] : memref<4x128xf32, #tpu.memory_space<vmem>>, vector<4x128xf32>
    %cst = arith.constant 69.0775528 : f32
    %1 = vector.broadcast %cst : f32 to vector<4x128xf32>
    %2 = arith.minimumf %0, %1 : vector<4x128xf32>
    %c0_1 = arith.constant 0 : index
    %c0_2 = arith.constant 0 : index
    %3 = vector.load %arg3[%c0_1, %c0_2] : memref<1x128xf32, #tpu.memory_space<vmem>>, vector<1x128xf32>
    %4 = math.exp %2 : vector<4x128xf32>
    %5 = vector.broadcast %3 : vector<1x128xf32> to vector<4x128xf32>
    %6 = arith.mulf %5, %4 : vector<4x128xf32>
    %cst_3 = arith.constant 1.000000e+00 : f32
    %7 = vector.broadcast %cst_3 : f32 to vector<4x128xf32>
    %8 = arith.addf %7, %6 : vector<4x128xf32>
    %c0_4 = arith.constant 0 : index
    %c0_5 = arith.constant 0 : index
    %9 = vector.load %arg4[%c0_4, %c0_5] : memref<1x128xf32, #tpu.memory_space<vmem>>, vector<1x128xf32>
    %10 = math.log %8 : vector<4x128xf32>
    %11 = vector.broadcast %9 : vector<1x128xf32> to vector<4x128xf32>
    %12 = arith.mulf %11, %10 : vector<4x128xf32>
    %13 = math.exp %12 : vector<4x128xf32>
    %cst_6 = arith.constant 1.000000e+00 : f32
    %14 = vector.broadcast %cst_6 : f32 to vector<4x128xf32>
    %15 = arith.subf %14, %13 : vector<4x128xf32>
    %c0_7 = arith.constant 0 : index
    %c0_8 = arith.constant 0 : index
    %16 = vector.load %arg5[%c0_7, %c0_8] : memref<4x128xf32, #tpu.memory_space<vmem>>, vector<4x128xf32>
    tpu.vector_store %arg5[%c0_7, %c0_8], %15 {strides = array<i32>} : memref<4x128xf32, #tpu.memory_space<vmem>>, vector<4x128xf32>,
    return
  }
  func.func @transform_0(%arg0: i32, %arg1: i32) -> (i32, i32) {
    %c0_i32 = arith.constant 0 : i32
    return %arg0, %arg1 : i32, i32
  }
  func.func @transform_1(%arg0: i32, %arg1: i32) -> (i32, i32) {
    %c0_i32 = arith.constant 0 : i32
    %c0_i32_0 = arith.constant 0 : i32
    return %c0_i32, %arg1 : i32, i32
  }
  func.func @transform_2(%arg0: i32, %arg1: i32) -> (i32, i32) {
    %c0_i32 = arith.constant 0 : i32
    %c0_i32_0 = arith.constant 0 : i32
    return %c0_i32, %arg1 : i32, i32
  }
  func.func @transform_3(%arg0: i32, %arg1: i32) -> (i32, i32) {
    %c0_i32 = arith.constant 0 : i32
    return %arg0, %arg1 : i32, i32
  }
}

</mosaic_0001>

<bundles_post_ra>
// kernel: tpu_custom_call.1
= control target key start
LH: loop header
LB: loop body
LE: loop exit
PB: predicated region body
PF: predicated region fallthrough
CT: control target
= control target key end

     0   :  { %8 = vsyncpa [#allocation3], 0  ;;  %s206_s0 = inlined_call_operand.hbm [shape: f32[4,128], index: 0, kind: input, shape index: {}]   ;;  %s207_s1 = inlined_call_operand.hbm [shape: f32[1,128], index: 1, kind: input, shape index: {}]   ;;  %s208_s2 = inlined_call_operand.vmem [shape: f32[1,128], index: 2, kind: input, shape index: {}]   ;;  %s209_s3 = inlined_call_operand.hbm [shape: f32[4,128], index: 3, kind: output, shape index: {}]  }
   0x1   :  { %9 = vsyncpa [#allocation6], 0 }
   0x2   :  { %10 = vsyncpa [#allocation4], 0  ;;  %s16_s14 = sshll.u32 %s206_s0, 4  ;;  %s171_s15 = smov [#allocation2]   ;;  %s17_s14 = int_to_ptr.hbm [resolvable:$true] %s16_s14 }
   0x3   :  { %s18_s16 = sshll.u32 %s171_s15, 4  ;;  %s27_s19 = sshll.u32 %s207_s1, 4  ;;  %s19_s16 = int_to_ptr.vmem [resolvable:$true] %s18_s16  ;;  %s28_s19 = int_to_ptr.hbm [resolvable:$true] %s27_s19 }
   0x4   :  { %21 = dma.hbm_to_vmem [thread:$0]  %s17_s14, 64, %s19_s16, [#allocation3]  }
   0x5   :  { %s172_s20 = smov [#allocation5]  }
   0x6   :  { %s29_s21 = sshll.u32 %s172_s20, 4  ;;  %s30_s21 = int_to_ptr.vmem [resolvable:$true] %s29_s21 }
   0x7   :  { %32 = dma.hbm_to_vmem [thread:$0]  %s28_s19, 16, %s30_s21, [#allocation6]  }
   0x8   :  { %165 = dma.done.wait [#allocation3], 64  }
   0x9   :  { %166 = vsyncadd [#allocation3], 4294967232 }
   0xa   :  { %167 = dma.done.wait [#allocation6], 16  }
   0xb   :  { %168 = vsyncadd [#allocation6], 4294967280  ;;  %v43_v0 = vld [vmem:[#allocation2] sm:$0xf]  ;;  %v85_v3 = vld [vmem:[#allocation5] ss:$0 sm:$0xff] }
   0xc   :  { %v44_v1 = vmin.f32 %v43_v0, 69.07755  ;;  %v86_v7 = vld [vmem:[%s208_s2] ss:$0 sm:$0xff]  ;;  %s173_s22 = smov [#allocation7]   ;;  %s71_s26 = sshll.u32 %s209_s3, 4  ;;  %s72_s26 = int_to_ptr.hbm [resolvable:$true] %s71_s26 }
   0xd   :  { %s69_s23 = sshll.u32 %s173_s22, 4  ;;  %s70_s23 = int_to_ptr.vmem [resolvable:$true] %s69_s23 }
   0xe   :  { %v46_v2 = vmul.f32 1.442695, %v44_v1 }
  0x10   :  { %87 = vpow2.f32 %v46_v2 }
  0x16   :  { %v88_v4 = vpop.eup %87 }
  0x17   :  { %v51_v5 = vmul.f32 %v88_v4, %v85_v3 }
  0x19   :  { %v52_v6 = vadd.f32 1.0, %v51_v5 }
  0x1b   :  { %89 = vlog2.f32 %v52_v6 }
  0x21   :  { %v90_v8 = vpop.eup %89 }
  0x22   :  { %v55_v9 = vmul.f32 0.6931472, %v90_v8 }
  0x24   :  { %v59_v10 = vmul.f32 %v86_v7, %v55_v9 }
  0x26   :  { %v60_v11 = vmul.f32 1.442695, %v59_v10 }
  0x28   :  { %91 = vpow2.f32 %v60_v11 }
  0x2e   :  { %v92_v12 = vpop.eup %91 }
  0x2f   :  { %v62_v13 = vsub.f32 1.0, %v92_v12 }
  0x31   :  { %63 = vst [vmem:[#allocation7] sm:$0xf] %v62_v13 }
  0x32   :  { %74 = dma.vmem_to_hbm [thread:$0]  %s70_s23, 64, %s72_s26, [#allocation4]  }
  0x33   :  { %169 = dma.done.wait [#allocation4], 64  }
  0x34   :  { %170 = vsyncadd [#allocation4], 4294967232 }
  0x35   :  { %79 = vsyncpa [#allocation3], 1 }
  0x36   :  { %80 = vsyncpa [#allocation6], 1 }
  0x37   :  { %81 = vsyncpa [#allocation4], 1 }

</bundles_post_ra>
